<compile_context>
chip_gen: v7x
topology: tpu7x:2x2x1
jax: 0.10.0
libtpu: 0.0.40
codegen_flags: <defaults>
</compile_context>

<pallas_src>
import functools

import jax
import jax.numpy as jnp
from jax.experimental import pallas as pl
from jax.experimental.pallas import tpu as pltpu


def _flatten_last_two(x):
    """Row-major flatten of the last two dims of a 3-D value.

    Expressed with static middle-dim slices + a lane-axis concatenate, which lower
    robustly in Mosaic (a sublane->lane merging jnp.reshape is layout-moving and
    less portable).  Only used for small T (< 128), so the unroll stays short.
    """
    _, t, _ = x.shape
    return jnp.concatenate([x[:, i, :] for i in range(t)], axis=-1)


def _imha_kernel(q_ref, k_ref, v_ref, wq_ref, wk_ref, wv_ref, wo_ref,
                 out_ref, attn_ref, *, block_b, seq_len, d_k, compute_dtype,
                 lane_dense_attn):
    """One grid step == block_b batch elements.

    q_ref/k_ref/v_ref : (block_b*T, d_model) VMEM slabs (compute_dtype)
    wq_ref            : (d_model, d_k)   -- 1/sqrt(d_k) pre-folded
    wk_ref, wv_ref    : (d_model, d_k)
    wo_ref            : (d_k, d_model)
    out_ref           : (block_b*T, d_model)
    attn_ref          : (block_b, T*T) lane-dense slab, or (block_b, T, T)
    """
    cd = compute_dtype
    T = seq_len
    n = block_b * T

    # Three separate projections: no in-kernel concatenate copy, no wasted MXU
    # blocks, no sub-lane column slicing of a fused result.  f32 accumulation.
    qp = jnp.dot(q_ref[...], wq_ref[...], preferred_element_type=jnp.float32)
    kp = jnp.dot(k_ref[...], wk_ref[...], preferred_element_type=jnp.float32)
    vp = jnp.dot(v_ref[...], wv_ref[...], preferred_element_type=jnp.float32)

    # Leading-dim split only (sublane-major retiling, no lane movement).
    qp = qp.reshape(block_b, T, d_k)
    kp = kp.reshape(block_b, T, d_k)
    vp = vp.reshape(block_b, T, d_k)

    # Scaled dot-product scores (scale already folded into wq); contract the last
    # dims of both operands -- no explicit transpose materialized.
    scores = jnp.einsum("bqd,bkd->bqk", qp.astype(cd), kp.astype(cd),
                        preferred_element_type=jnp.float32)        # (block_b, T, T)

    # Numerically-stable softmax along the key axis, f32.  Exact normalization:
    # attn is the user-facing "interpretable" output, rows must sum to 1.
    scores = scores - jnp.max(scores, axis=-1, keepdims=True)
    scores = jnp.exp(scores)
    attn = scores / jnp.sum(scores, axis=-1, keepdims=True)

    head = jnp.einsum("bts,bsd->btd", attn.astype(cd), vp.astype(cd),
                      preferred_element_type=jnp.float32)          # (block_b, T, d_k)

    # Output projection back to d_model, written as one (n, d_model) slab.
    out = jnp.dot(head.reshape(n, d_k).astype(cd), wo_ref[...],
                  preferred_element_type=jnp.float32)              # (n, d_model)
    out_ref[...] = out.astype(out_ref.dtype)

    if lane_dense_attn:
        # Lane-dense store: one (block_b, T*T) slab instead of T(=8)-lane rows.
        attn_ref[...] = _flatten_last_two(attn).astype(attn_ref.dtype)
    else:
        attn_ref[...] = attn.astype(attn_ref.dtype)


def prepare_params(wq, wk, wv, wo):
    """One-time weight transform: fold 1/sqrt(d_k) into the query projection."""
    d_k = wq.shape[1]
    scale = 1.0 / jnp.sqrt(jnp.float32(d_k))
    return wq * scale, wk, wv, wo


@functools.partial(
    jax.jit,
    static_argnames=("block_b", "compute_dtype", "attn_dtype", "lane_dense_attn"))
def interpretable_multi_head_attention(q, k, v, wq_s, wk, wv, wo, *,
                                       block_b=None,
                                       compute_dtype=jnp.float32,
                                       attn_dtype=jnp.float32,
                                       lane_dense_attn=None):
    """Fused Pallas forward.

    Returns:
      outputs: (B, T, d_model)
      attn:    (B, T, T)  -- identical across heads; the module's (n_head, B, T, T)
               is a lazy broadcast left to the consumer.
    """
    B, T, d_model = q.shape
    d_k = wo.shape[0]

    if block_b is None:
        # Single grid step by default: v5e/v6e have one TensorCore, and each extra
        # step costs ~0.35 us of pipeline overhead which dominates at small shapes.
        # On v7x with production-sized per-step work, pass block_b explicitly so
        # grid_b >= 2 and the "parallel" axis can shard across the two TensorCores.
        block_b = B
    assert B % block_b == 0
    grid_b = B // block_b
    n = block_b * T

    if lane_dense_attn is None:
        lane_dense_attn = T < 128   # for T >= 128 the native layout is lane-dense

    cd = compute_dtype
    # Cast once in the wrapper: halves HBM->VMEM DMA bytes when cd == bfloat16.
    q2 = q.reshape(B * T, d_model).astype(cd)
    k2 = k.reshape(B * T, d_model).astype(cd)
    v2 = v.reshape(B * T, d_model).astype(cd)
    wq_c = wq_s.astype(cd)
    wk_c = wk.astype(cd)
    wv_c = wv.astype(cd)
    wo_c = wo.astype(cd)

    cd_b = jnp.dtype(cd).itemsize
    out_b = jnp.dtype(q.dtype).itemsize
    at_b = jnp.dtype(attn_dtype).itemsize
    w_bytes = (3 * d_model * d_k + d_k * d_model) * cd_b

    # Advisory cost estimate so XLA can schedule neighbouring ops around the call.
    cost = pl.CostEstimate(
        flops=2 * B * T * d_k * (4 * d_model + 2 * T),
        transcendentals=B * T * T,
        bytes_accessed=(3 * B * T * d_model * cd_b + B * T * d_model * out_b
                        + B * T * T * at_b + w_bytes))

    # Explicit VMEM budget (scoped defaults: 16 MiB v5e / 32 MiB v6e+v7x).  Capped
    # at 48 MiB to leave headroom under v7x's 64 MiB physical VMEM.
    vmem_est = (2 * (3 * n * d_model * cd_b + n * d_model * out_b
                     + block_b * T * T * at_b)
                + 8 * block_b * T * T * 4 + 4 * n * d_k * 4 + w_bytes)
    vmem_limit = int(min(max(2 * vmem_est, 16 * 2 ** 20), 48 * 2 ** 20))

    kernel = functools.partial(_imha_kernel, block_b=block_b, seq_len=T, d_k=d_k,
                               compute_dtype=cd, lane_dense_attn=lane_dense_attn)

    if lane_dense_attn:
        attn_shape = jax.ShapeDtypeStruct((B, T * T), attn_dtype)
        attn_spec = pl.BlockSpec((block_b, T * T), lambda b: (b, 0))
    else:
        attn_shape = jax.ShapeDtypeStruct((B, T, T), attn_dtype)
        attn_spec = pl.BlockSpec((block_b, T, T), lambda b: (b, 0, 0))

    out2, attn = pl.pallas_call(
        kernel,
        out_shape=(jax.ShapeDtypeStruct((B * T, d_model), q.dtype), attn_shape),
        grid_spec=pltpu.PrefetchScalarGridSpec(
            num_scalar_prefetch=0,
            grid=(grid_b,),
            in_specs=[
                pl.BlockSpec((n, d_model), lambda b: (b, 0)),         # q slab
                pl.BlockSpec((n, d_model), lambda b: (b, 0)),         # k slab
                pl.BlockSpec((n, d_model), lambda b: (b, 0)),         # v slab
                pl.BlockSpec((d_model, d_k), lambda b: (0, 0)),       # Wq (scaled)
                pl.BlockSpec((d_model, d_k), lambda b: (0, 0)),       # Wk
                pl.BlockSpec((d_model, d_k), lambda b: (0, 0)),       # Wv
                pl.BlockSpec((d_k, d_model), lambda b: (0, 0)),       # Wo
            ],
            out_specs=[
                pl.BlockSpec((n, d_model), lambda b: (b, 0)),
                attn_spec,
            ],
        ),
        compiler_params=pltpu.CompilerParams(
            dimension_semantics=("parallel",),
            vmem_limit_bytes=vmem_limit),
        cost_estimate=cost,
    )(q2, k2, v2, wq_c, wk_c, wv_c, wo_c)

    attn = attn.reshape(B, T, T)          # free metadata reshape on the HBM array
    return out2.reshape(B, T, d_model), attn


def _reference(q, k, v, wq, wk, wv, wo, n_head):
    """Plain-JAX reference mirroring the PyTorch forward (eval mode, shared heads)."""
    d_k = wq.shape[1]
    qp = q @ wq
    kp = k @ wk
    vp = v @ wv
    scores = jnp.einsum("btd,bsd->bts", qp, kp) / jnp.sqrt(jnp.float32(d_k))
    attn = jax.nn.softmax(scores, axis=-1)
    head = jnp.einsum("bts,bsd->btd", attn, vp)
    outputs = head @ wo          # mean over identical heads == single head
    attn_stacked = jnp.broadcast_to(attn[None], (n_head,) + attn.shape)
    return outputs, attn_stacked


if __name__ == "__main__":
    # Module hyperparameters (small, consistent with the forward semantics).
    n_head = 4
    d_model = 32
    d_k = d_model // n_head          # = d_v = 8
    B, T = 8, 8                      # block_b defaults to B -> grid=(1,)

    key = jax.random.PRNGKey(0)
    kq, kk, kv, kwq, kwk, kwv, kwo = jax.random.split(key, 7)

    q = jax.random.normal(kq, (B, T, d_model), dtype=jnp.float32)
    k = jax.random.normal(kk, (B, T, d_model), dtype=jnp.float32)
    v = jax.random.normal(kv, (B, T, d_model), dtype=jnp.float32)

    # nn.Linear(d_model, d_k, bias=False) weights, stored as (in, out).
    wq = jax.random.normal(kwq, (d_model, d_k), dtype=jnp.float32) * 0.1
    wk = jax.random.normal(kwk, (d_model, d_k), dtype=jnp.float32) * 0.1
    wv = jax.random.normal(kwv, (d_model, d_k), dtype=jnp.float32) * 0.1
    wo = jax.random.normal(kwo, (d_k, d_model), dtype=jnp.float32) * 0.1

    wq_s, wk_p, wv_p, wo_p = prepare_params(wq, wk, wv, wo)

    # f32 path (exact softmax normalization).
    out, attn = interpretable_multi_head_attention(q, k, v, wq_s, wk_p, wv_p, wo_p)
    out, attn = jax.block_until_ready((out, attn))

    ref_out, ref_attn = _reference(q, k, v, wq, wk, wv, wo, n_head)
    assert out.shape == (B, T, d_model)
    assert attn.shape == (B, T, T)
    assert jnp.allclose(out, ref_out, atol=1e-4, rtol=1e-4)
    # Module-level attention output is identical maps across heads (lazy broadcast).
    attn_heads = jnp.broadcast_to(attn[None], (n_head, B, T, T))
    assert jnp.allclose(attn_heads, ref_attn, atol=1e-4, rtol=1e-4)

    # bf16 MXU path (full-rate on v6e/v7x, halves activation DMA); looser tolerance
    # (documented double rounding: bf16 operands, f32 accumulation).
    out_bf, attn_bf = interpretable_multi_head_attention(
        q, k, v, wq_s, wk_p, wv_p, wo_p, compute_dtype=jnp.bfloat16)
    out_bf, attn_bf = jax.block_until_ready((out_bf, attn_bf))
    assert jnp.allclose(out_bf, ref_out, atol=8e-2, rtol=8e-2)
    assert jnp.allclose(attn_bf, ref_attn[0], atol=8e-2, rtol=8e-2)

    print("KERNEL_OK")
</pallas_src>

<mosaic_0001>
module attributes {stable_mosaic.version = 11 : i64} {
  func.func @_imha_kernel(%arg0: i32, %arg1: memref<64x32xf32, #tpu.memory_space<vmem>>, %arg2: memref<64x32xf32, #tpu.memory_space<vmem>>, %arg3: memref<64x32xf32, #tpu.memory_space<vmem>>, %arg4: memref<32x8xf32, #tpu.memory_space<vmem>>, %arg5: memref<32x8xf32, #tpu.memory_space<vmem>>, %arg6: memref<32x8xf32, #tpu.memory_space<vmem>>, %arg7: memref<8x32xf32, #tpu.memory_space<vmem>>, %arg8: memref<64x32xf32, #tpu.memory_space<vmem>>, %arg9: memref<8x64xf32, #tpu.memory_space<vmem>>) attributes {dimension_semantics = [#tpu.dimension_semantics<parallel>], iteration_bounds = array<i64: 1>, scalar_prefetch = 0 : i64, scratch_operands = 0 : i64, tpu.core_type = #tpu.core_type<tc>, window_params = [{transform_indices = @transform_0, window_bounds = array<i64: 64, 32>}, {transform_indices = @transform_1, window_bounds = array<i64: 64, 32>}, {transform_indices = @transform_2, window_bounds = array<i64: 64, 32>}, {pipeline_mode = #tpu.pipeline_mode<synchronous>, transform_indices = @transform_3, window_bounds = array<i64: 32, 8>}, {pipeline_mode = #tpu.pipeline_mode<synchronous>, transform_indices = @transform_4, window_bounds = array<i64: 32, 8>}, {pipeline_mode = #tpu.pipeline_mode<synchronous>, transform_indices = @transform_5, window_bounds = array<i64: 32, 8>}, {pipeline_mode = #tpu.pipeline_mode<synchronous>, transform_indices = @transform_6, window_bounds = array<i64: 8, 32>}, {transform_indices = @transform_7, window_bounds = array<i64: 64, 32>}, {transform_indices = @transform_8, window_bounds = array<i64: 8, 64>}]} {
    %c0 = arith.constant 0 : index
    %c0_0 = arith.constant 0 : index
    %0 = vector.load %arg1[%c0, %c0_0] : memref<64x32xf32, #tpu.memory_space<vmem>>, vector<64x32xf32>
    %c0_1 = arith.constant 0 : index
    %c0_2 = arith.constant 0 : index
    %1 = vector.load %arg4[%c0_1, %c0_2] : memref<32x8xf32, #tpu.memory_space<vmem>>, vector<32x8xf32>
    %cst = arith.constant dense<0.000000e+00> : vector<64x8xf32>
    %2 = tpu.matmul %0, %1, %cst {dimension_numbers = #tpu.dot_dimension_numbers<[1], [0], [0], [1], [0, 0, 1, 1], [], []>} : vector<64x32xf32>, vector<32x8xf32>, vector<64x8xf32> -> vector<64x8xf32>
    %c0_3 = arith.constant 0 : index
    %c0_4 = arith.constant 0 : index
    %3 = vector.load %arg2[%c0_3, %c0_4] : memref<64x32xf32, #tpu.memory_space<vmem>>, vector<64x32xf32>
    %c0_5 = arith.constant 0 : index
    %c0_6 = arith.constant 0 : index
    %4 = vector.load %arg5[%c0_5, %c0_6] : memref<32x8xf32, #tpu.memory_space<vmem>>, vector<32x8xf32>
    %cst_7 = arith.constant dense<0.000000e+00> : vector<64x8xf32>
    %5 = tpu.matmul %3, %4, %cst_7 {dimension_numbers = #tpu.dot_dimension_numbers<[1], [0], [0], [1], [0, 0, 1, 1], [], []>} : vector<64x32xf32>, vector<32x8xf32>, vector<64x8xf32> -> vector<64x8xf32>
    %c0_8 = arith.constant 0 : index
    %c0_9 = arith.constant 0 : index
    %6 = vector.load %arg3[%c0_8, %c0_9] : memref<64x32xf32, #tpu.memory_space<vmem>>, vector<64x32xf32>
    %c0_10 = arith.constant 0 : index
    %c0_11 = arith.constant 0 : index
    %7 = vector.load %arg6[%c0_10, %c0_11] : memref<32x8xf32, #tpu.memory_space<vmem>>, vector<32x8xf32>
    %cst_12 = arith.constant dense<0.000000e+00> : vector<64x8xf32>
    %8 = tpu.matmul %6, %7, %cst_12 {dimension_numbers = #tpu.dot_dimension_numbers<[1], [0], [0], [1], [0, 0, 1, 1], [], []>} : vector<64x32xf32>, vector<32x8xf32>, vector<64x8xf32> -> vector<64x8xf32>
    %9 = vector.shape_cast %2 : vector<64x8xf32> to vector<8x8x8xf32>
    %10 = vector.shape_cast %5 : vector<64x8xf32> to vector<8x8x8xf32>
    %11 = vector.shape_cast %8 : vector<64x8xf32> to vector<8x8x8xf32>
    "tpu.trace_start"() <{level = 10 : i32, message = "bqd,bkd->bqk"}> : () -> ()
    %cst_13 = arith.constant dense<0.000000e+00> : vector<8x8x8xf32>
    %12 = tpu.matmul %9, %10, %cst_13 {dimension_numbers = #tpu.dot_dimension_numbers<[2], [2], [1], [1], [0, 0, 0, 1, 1, 1], [0], [0]>} : vector<8x8x8xf32>, vector<8x8x8xf32>, vector<8x8x8xf32> -> vector<8x8x8xf32>
    "tpu.trace_stop"() : () -> ()
    %cst_14 = arith.constant dense<0xFF800000> : vector<8x8xf32>
    %13 = vector.multi_reduction <maximumf>, %12, %cst_14 [2] : vector<8x8x8xf32> to vector<8x8xf32>
    %14 = vector.shape_cast %13 : vector<8x8xf32> to vector<8x8x1xf32>
    %15 = vector.broadcast %14 : vector<8x8x1xf32> to vector<8x8x8xf32>
    %16 = arith.subf %12, %15 : vector<8x8x8xf32>
    %17 = math.exp %16 : vector<8x8x8xf32>
    %cst_15 = arith.constant dense<0.000000e+00> : vector<8x8xf32>
    %18 = vector.multi_reduction <add>, %17, %cst_15 [2] : vector<8x8x8xf32> to vector<8x8xf32>
    %19 = vector.shape_cast %18 : vector<8x8xf32> to vector<8x8x1xf32>
    %20 = vector.broadcast %19 : vector<8x8x1xf32> to vector<8x8x8xf32>
    %21 = arith.divf %17, %20 : vector<8x8x8xf32>
    "tpu.trace_start"() <{level = 10 : i32, message = "bts,bsd->btd"}> : () -> ()
    %cst_16 = arith.constant dense<0.000000e+00> : vector<8x8x8xf32>
    %22 = tpu.matmul %21, %11, %cst_16 {dimension_numbers = #tpu.dot_dimension_numbers<[2], [1], [1], [2], [0, 0, 0, 1, 1, 2], [0], [0]>} : vector<8x8x8xf32>, vector<8x8x8xf32>, vector<8x8x8xf32> -> vector<8x8x8xf32>
    "tpu.trace_stop"() : () -> ()
    %23 = vector.shape_cast %22 : vector<8x8x8xf32> to vector<64x8xf32>
    %c0_17 = arith.constant 0 : index
    %c0_18 = arith.constant 0 : index
    %24 = vector.load %arg7[%c0_17, %c0_18] : memref<8x32xf32, #tpu.memory_space<vmem>>, vector<8x32xf32>
    %cst_19 = arith.constant dense<0.000000e+00> : vector<64x32xf32>
    %25 = tpu.matmul %23, %24, %cst_19 {dimension_numbers = #tpu.dot_dimension_numbers<[1], [0], [0], [1], [0, 0, 1, 1], [], []>} : vector<64x8xf32>, vector<8x32xf32>, vector<64x32xf32> -> vector<64x32xf32>
    %c0_20 = arith.constant 0 : index
    %c0_21 = arith.constant 0 : index
    %26 = vector.load %arg8[%c0_20, %c0_21] : memref<64x32xf32, #tpu.memory_space<vmem>>, vector<64x32xf32>
    tpu.vector_store %arg8[%c0_20, %c0_21], %25 {strides = array<i32>} : memref<64x32xf32, #tpu.memory_space<vmem>>, vector<64x32xf32>,
    %27 = vector.extract_strided_slice %21 {offsets = [0, 0, 0], sizes = [8, 1, 8], strides = [1, 1, 1]} : vector<8x8x8xf32> to vector<8x1x8xf32>
    %28 = vector.shape_cast %27 : vector<8x1x8xf32> to vector<8x8xf32>
    %29 = vector.extract_strided_slice %21 {offsets = [0, 1, 0], sizes = [8, 1, 8], strides = [1, 1, 1]} : vector<8x8x8xf32> to vector<8x1x8xf32>
    %30 = vector.shape_cast %29 : vector<8x1x8xf32> to vector<8x8xf32>
    %31 = vector.extract_strided_slice %21 {offsets = [0, 2, 0], sizes = [8, 1, 8], strides = [1, 1, 1]} : vector<8x8x8xf32> to vector<8x1x8xf32>
    %32 = vector.shape_cast %31 : vector<8x1x8xf32> to vector<8x8xf32>
    %33 = vector.extract_strided_slice %21 {offsets = [0, 3, 0], sizes = [8, 1, 8], strides = [1, 1, 1]} : vector<8x8x8xf32> to vector<8x1x8xf32>
    %34 = vector.shape_cast %33 : vector<8x1x8xf32> to vector<8x8xf32>
    %35 = vector.extract_strided_slice %21 {offsets = [0, 4, 0], sizes = [8, 1, 8], strides = [1, 1, 1]} : vector<8x8x8xf32> to vector<8x1x8xf32>
    %36 = vector.shape_cast %35 : vector<8x1x8xf32> to vector<8x8xf32>
    %37 = vector.extract_strided_slice %21 {offsets = [0, 5, 0], sizes = [8, 1, 8], strides = [1, 1, 1]} : vector<8x8x8xf32> to vector<8x1x8xf32>
    %38 = vector.shape_cast %37 : vector<8x1x8xf32> to vector<8x8xf32>
    %39 = vector.extract_strided_slice %21 {offsets = [0, 6, 0], sizes = [8, 1, 8], strides = [1, 1, 1]} : vector<8x8x8xf32> to vector<8x1x8xf32>
    %40 = vector.shape_cast %39 : vector<8x1x8xf32> to vector<8x8xf32>
    %41 = vector.extract_strided_slice %21 {offsets = [0, 7, 0], sizes = [8, 1, 8], strides = [1, 1, 1]} : vector<8x8x8xf32> to vector<8x1x8xf32>
    %42 = vector.shape_cast %41 : vector<8x1x8xf32> to vector<8x8xf32>
    %43 = tpu.concatenate %28, %30, %32, %34, %36, %38, %40, %42 in 1 : vector<8x8xf32>, vector<8x8xf32>, vector<8x8xf32>, vector<8x8xf32>, vector<8x8xf32>, vector<8x8xf32>, vector<8x8xf32>, vector<8x8xf32> -> vector<8x64xf32>
    %c0_22 = arith.constant 0 : index
    %c0_23 = arith.constant 0 : index
    %44 = vector.load %arg9[%c0_22, %c0_23] : memref<8x64xf32, #tpu.memory_space<vmem>>, vector<8x64xf32>
    tpu.vector_store %arg9[%c0_22, %c0_23], %43 {strides = array<i32>} : memref<8x64xf32, #tpu.memory_space<vmem>>, vector<8x64xf32>,
    return
  }
  func.func @transform_0(%arg0: i32) -> (i32, i32) {
    %c0_i32 = arith.constant 0 : i32
    %c0_i32_0 = arith.constant 0 : i32
    return %arg0, %c0_i32 : i32, i32
  }
  func.func @transform_1(%arg0: i32) -> (i32, i32) {
    %c0_i32 = arith.constant 0 : i32
    %c0_i32_0 = arith.constant 0 : i32
    return %arg0, %c0_i32 : i32, i32
  }
  func.func @transform_2(%arg0: i32) -> (i32, i32) {
    %c0_i32 = arith.constant 0 : i32
    %c0_i32_0 = arith.constant 0 : i32
    return %arg0, %c0_i32 : i32, i32
  }
  func.func @transform_3(%arg0: i32) -> (i32, i32) {
    %c0_i32 = arith.constant 0 : i32
    %c0_i32_0 = arith.constant 0 : i32
    %c0_i32_1 = arith.constant 0 : i32
    return %c0_i32, %c0_i32_0 : i32, i32
  }
  func.func @transform_4(%arg0: i32) -> (i32, i32) {
    %c0_i32 = arith.constant 0 : i32
    %c0_i32_0 = arith.constant 0 : i32
    %c0_i32_1 = arith.constant 0 : i32
    return %c0_i32, %c0_i32_0 : i32, i32
  }
  func.func @transform_5(%arg0: i32) -> (i32, i32) {
    %c0_i32 = arith.constant 0 : i32
    %c0_i32_0 = arith.constant 0 : i32
    %c0_i32_1 = arith.constant 0 : i32
    return %c0_i32, %c0_i32_0 : i32, i32
  }
  func.func @transform_6(%arg0: i32) -> (i32, i32) {
    %c0_i32 = arith.constant 0 : i32
    %c0_i32_0 = arith.constant 0 : i32
    %c0_i32_1 = arith.constant 0 : i32
    return %c0_i32, %c0_i32_0 : i32, i32
  }
  func.func @transform_7(%arg0: i32) -> (i32, i32) {
    %c0_i32 = arith.constant 0 : i32
    %c0_i32_0 = arith.constant 0 : i32
    return %arg0, %c0_i32 : i32, i32
  }
  func.func @transform_8(%arg0: i32) -> (i32, i32) {
    %c0_i32 = arith.constant 0 : i32
    %c0_i32_0 = arith.constant 0 : i32
    return %arg0, %c0_i32 : i32, i32
  }
}

</mosaic_0001>

<bundles_post_ra>
// kernel: interpretable_multi_head_attention.1
= control target key start
LH: loop header
LB: loop body
LE: loop exit
PB: predicated region body
PF: predicated region fallthrough
CT: control target
= control target key end

     0   :  { %14 = vsyncpa [#allocation3], 0  ;;  %s2971_s0 = inlined_call_operand.vmem [shape: f32[64,32], index: 0, kind: input, shape index: {}]   ;;  %s2972_s1 = inlined_call_operand.vmem [shape: f32[64,32], index: 1, kind: input, shape index: {}]   ;;  %s2973_s2 = inlined_call_operand.hbm [shape: f32[64,32], index: 2, kind: input, shape index: {}]   ;;  %s2974_s3 = inlined_call_operand.vmem [shape: f32[32,8], index: 3, kind: input, shape index: {}]   ;;  %s2975_s4 = inlined_call_operand.vmem [shape: f32[32,8], index: 4, kind: input, shape index: {}]   ;;  %s2976_s5 = inlined_call_operand.vmem [shape: f32[32,8], index: 5, kind: input, shape index: {}]   ;;  %s2977_s6 = inlined_call_operand.vmem [shape: f32[8,32], index: 6, kind: input, shape index: {}]   ;;  %s2978_s7 = inlined_call_operand.hbm [shape: f32[64,32], index: 7, kind: output, shape index: {0}]   ;;  %s2979_s8 = inlined_call_operand.vmem [shape: f32[8,64], index: 8, kind: output, shape index: {1}]  }
   0x1   :  { %15 = vsyncpa [#allocation4], 0  ;;  %s2469_s27 = smov [#allocation2]   ;;  %s2421_s9 = scalar_lea.hbm %s2973_s2, 1024 }
   0x2   :  { %s25_s28 = sshll.u32 %s2469_s27, 4  ;;  %p2422_p0 = scmp.ne.s32.totalorder %s2973_s2, %s2421_s9  ;;  %s26_s28 = int_to_ptr.vmem [resolvable:$true] %s25_s28 }
   0x3   :  { %p2425_p1 = scmp.lt.u32.totalorder %s2421_s9, %s2973_s2 }
   0x5   :  { %p2427_p2 = pnand %p2425_p1, %p2422_p0 }
   0x7   :  { %2430 = shalt.err (!%p2427_p2)
}
   0x8   :  { %s2431_s14 = scalar_lea.vmem %s26_s28, 1024  ;;  %p2436_p4 = scmp.lt.s32.totalorder %s26_s28, %s26_s28 }
   0x9   :  { %p2432_p3 = scmp.ne.s32.totalorder %s26_s28, %s2431_s14  ;;  %p2437_p5 = scmp.lt.s32.totalorder %s2431_s14, %s2431_s14 }
   0xb   :  { %p2438_p6 = por %p2437_p5, %p2436_p4 }
   0xd   :  { %p2439_p7 = pnand %p2438_p6, %p2432_p3 }
   0xf   :  { %2442 = shalt.err (!%p2439_p7)
}
  0x10   :  { %s2470_s15 = smov 128   ;;  %s2471_s16 = smov 8  }
  0x11   :  { %31 = dma.hbm_to_vmem [thread:$0]  %s2973_s2, 1024, %s26_s28, [#allocation3], %s2470_s15, %s2470_s15, %s2471_s16  }
  0x12   :  { %2465 = dma.done.wait [#allocation3], 1024  }
  0x13   :  { %2466 = vsyncadd [#allocation3], 4294966272  ;;  %vm55_vm0 = vcmask 261120   ;;  %v51_v0 = vld [vmem:[%s2974_s3] sm:$0xff]  ;;  %v52_v1 = vld [vmem:[%s2974_s3 + $0x8] sm:$0xff]  ;;  %v2472_v38 = vmov 0.0  }
  0x14   :  { %v53_v2 = vld [vmem:[%s2974_s3 + $0x10] sm:$0xff]  ;;  %v2349_v3 = vpack.c.bf16 %v52_v1, %v51_v0  ;;  %v54_v4 = vld [vmem:[%s2974_s3 + $0x18] sm:$0xff]  ;;  %v47_v5 = vld [vmem:[%s2971_s0 + $0x20] sm:$0xff]  ;;  %vm2473_vm1 = vmmov 0   ;;  %vm467_vm2 = vcmask 64512   ;;  %vm1887_vm3 = vcmask 1041409  }
  0x15   :  { %v2353_v6 = vpack.c.bf16 %v54_v4, %v53_v2  ;;  %2209 = vmatprep.mubr.msk.f32.mxu1 %vm55_vm0, %v47_v5  ;;  %v193_v7 = vld [vmem:[%s2975_s4] sm:$0xff]  ;;  %v194_v8 = vld [vmem:[%s2975_s4 + $0x8] sm:$0xff]  ;;  %v195_v11 = vld [vmem:[%s2975_s4 + $0x10] sm:$0xff]  ;;  %vm1890_vm4 = vcmask 1042434   ;;  %vm1893_vm5 = vcmask 1043459   ;;  %vm1896_vm6 = vcmask 1044484  }
  0x16   :  { %2373 = vmatprep.subr.bf16.mxu1 %v2349_v3  ;;  %2350 = vmatprep.subr.bf16.mxu0 %v2349_v3  ;;  %v43_v9 = vld [vmem:[%s2971_s0] sm:$0xff]  ;;  %v2357_v10 = vpack.c.bf16 %v194_v8, %v193_v7  ;;  %v196_v12 = vld [vmem:[%s2975_s4 + $0x18] sm:$0xff]  ;;  %v48_v13 = vld [vmem:[%s2971_s0 + $0x28] sm:$0xff]  ;;  %vm1902_vm7 = vcmask 1046534   ;;  %vm1899_vm8 = vcmask 1045509   ;;  %vm1905_vm9 = vcmask 1047559  }
  0x17   :  { %2375 = vmatpush3.bf16.msra.mxu1 %v2349_v3  ;;  %2352 = vmatpush3.bf16.msra.mxu0 %v2349_v3  ;;  %v44_v14 = vld [vmem:[%s2971_s0 + $0x8] sm:$0xff]  ;;  %v334_v15 = vld [vmem:[%s2976_s5] sm:$0xff]  ;;  %v49_v17 = vld [vmem:[%s2971_s0 + $0x30] sm:$0xff]  ;;  %v2361_v18 = vpack.c.bf16 %v196_v12, %v195_v11  ;;  %s2476_s27 = smov 40   ;;  %s2477_s28 = smov 32   ;;  %vm2028_vm10 = vcmask 130048  }
  0x18   :  { %2374 = vmatprep.subr.bf16.mxu1 %v2353_v6  ;;  %2354 = vmatprep.subr.bf16.mxu0 %v2353_v6  ;;  %v335_v16 = vld [vmem:[%s2976_s5 + $0x8] sm:$0xff]  ;;  %v45_v19 = vld [vmem:[%s2971_s0 + $0x10] sm:$0xff]  ;;  %v50_v21 = vld [vmem:[%s2971_s0 + $0x38] sm:$0xff]  ;;  %s2478_s29 = smov 56   ;;  %s2479_s30 = smov 48   ;;  %vm2030_vm11 = vcmask 195584  }
  0x19   :  { %2203 = vmatprep.mubr.msk.f32.mxu0 %vm55_vm0, %v43_v9  ;;  %v2365_v20 = vpack.c.bf16 %v335_v16, %v334_v15  ;;  %v46_v22 = vld [vmem:[%s2971_s0 + $0x18] sm:$0xff]  ;;  %v185_v23 = vld [vmem:[%s2972_s1] sm:$0xff]  ;;  %v186_v24 = vld [vmem:[%s2972_s1 + $0x8] sm:$0xff]  ;;  %vm2033_vm12 = vcmask 326656   ;;  %vm2035_vm13 = vcmask 392192   ;;  %vm2037_vm14 = vcmask 457728  }
  0x1a   :  { %v187_v25 = vld [vmem:[%s2972_s1 + $0x10] sm:$0xff]  ;;  %v188_v26 = vld [vmem:[%s2972_s1 + $0x18] sm:$0xff]  ;;  %v189_v27 = vld [vmem:[%s2972_s1 + $0x20] sm:$0xff]  ;;  %vm2039_vm15 = vcmask 523264  }
  0x1b   :  { %2376 = vmatpush3.bf16.msra.mxu1 %v2353_v6  ;;  %2356 = vmatpush3.bf16.msra.mxu0 %v2353_v6  ;;  %v190_v28 = vld [vmem:[%s2972_s1 + $0x28] sm:$0xff]  ;;  %v191_v29 = vld [vmem:[%s2972_s1 + $0x30] sm:$0xff]  ;;  %v192_v30 = vld [vmem:[%s2972_s1 + $0x38] sm:$0xff]  ;;  %s2474_s1 = smov 16  }
  0x1c   :  { %2358 = vmatprep.subr.bf16.mxu1 %v2357_v10  ;;  %2366 = vmatprep.subr.bf16.mxu0 %v2365_v20  ;;  %v336_v31 = vld [vmem:[%s2976_s5 + $0x10] sm:$0xff]  ;;  %v337_v32 = vld [vmem:[%s2976_s5 + $0x18] sm:$0xff]  ;;  %v326_v34 = vld [vmem:[#allocation2] sm:$0xff]  ;;  %s2475_s5 = smov 24  }
  0x1d   :  { %v2369_v33 = vpack.c.bf16 %v337_v32, %v336_v31  ;;  %v327_v35 = vld [vmem:[#allocation2 + $0x8] sm:$0xff]  ;;  %v328_v36 = vld [vmem:[#allocation2 + $0x10] sm:$0xff]  ;;  %v329_v37 = vld [vmem:[#allocation2 + $0x18] sm:$0xff] }
  0x1e   :  { %2210 = vmatmul.mubr.msk.f32.vlgmr.msra.gmra.mrb[0].mxu1 %vm55_vm0, %v48_v13  ;;  %2204 = vmatmul.mubr.msk.f32.vlgmr.msra.gmra.mrb[0].mxu0 %vm55_vm0, %v44_v14  ;;  %v330_v39 = vld [vmem:[#allocation2 + $0x20] sm:$0xff]  ;;  %v331_v40 = vld [vmem:[#allocation2 + $0x28] sm:$0xff]  ;;  %v332_v41 = vld [vmem:[#allocation2 + $0x30] sm:$0xff] }
  0x1f   :  { %2360 = vmatpush3.bf16.msra.mxu1 %v2357_v10  ;;  %2212 = vmatprep.mubr.msk.f32.mxu1 %vm55_vm0, %v49_v17  ;;  %v333_v42 = vld [vmem:[#allocation2 + $0x38] sm:$0xff] }
  0x20   :  { %2362 = vmatprep.subr.bf16.mxu1 %v2361_v18  ;;  %2206 = vmatprep.mubr.msk.f32.mxu0 %vm55_vm0, %v45_v19 }
  0x21   :  { %2368 = vmatpush3.bf16.msra.mxu0 %v2365_v20 }
  0x22   :  { %2213 = vmatmul.mubr.msk.f32.gmra.mrb[2].mxu1 %vm55_vm0, %v50_v21  ;;  %2207 = vmatmul.mubr.msk.f32.gmra.mrb[2].mxu0 %vm55_vm0, %v46_v22 }
  0x23   :  { %2364 = vmatpush3.bf16.msra.mxu1 %v2361_v18  ;;  %2223 = vmatprep.mubr.msk.f32.mxu1 %vm55_vm0, %v185_v23 }
  0x24   :  { %2370 = vmatprep.subr.bf16.mxu0 %v2369_v33  ;;  %2243 = vmatprep.mubr.msk.f32.mxu0 %vm55_vm0, %v326_v34 }
  0x25   :  { %2372 = vmatpush3.bf16.msra.mxu0 %v2369_v33  ;;  %2255 = vmatprep.subr.mxu1 %v2472_v38 }
  0x26   :  { %2224 = vmatmul.mubr.msk.f32.vlgmr.msra.gmra.mrb[4].mxu1 %vm55_vm0, %v186_v24  ;;  %2275 = vmatprep.subr.mxu0 %v2472_v38 }
  0x27   :  { %2226 = vmatprep.mubr.msk.f32.mxu1 %vm55_vm0, %v187_v25 }
  0x28   :  { %2244 = vmatmul.mubr.msk.f32.vlgmr.msra.gmra.mrb[4].mxu0 %vm55_vm0, %v327_v35 }
  0x29   :  { %2246 = vmatprep.mubr.msk.f32.mxu0 %vm55_vm0, %v328_v36 }
  0x2a   :  { %2227 = vmatmul.mubr.msk.f32.gmra.mrb[6].mxu1 %vm55_vm0, %v188_v26 }
  0x2b   :  { %2229 = vmatprep.mubr.msk.f32.mxu1 %vm55_vm0, %v189_v27 }
  0x2c   :  { %2247 = vmatmul.mubr.msk.f32.gmra.mrb[6].mxu0 %vm55_vm0, %v329_v37 }
  0x2d   :  { %2249 = vmatprep.mubr.msk.f32.mxu0 %vm55_vm0, %v330_v39 }
  0x2e   :  { %2230 = vmatmul.mubr.msk.f32.gmra.mrb[8].mxu1 %vm55_vm0, %v190_v28 }
  0x2f   :  { %2232 = vmatprep.mubr.msk.f32.mxu1 %vm55_vm0, %v191_v29 }
  0x30   :  { %2250 = vmatmul.mubr.msk.f32.gmra.mrb[8].mxu0 %vm55_vm0, %v331_v40 }
  0x31   :  { %2252 = vmatprep.mubr.msk.f32.mxu0 %vm55_vm0, %v332_v41 }
  0x32   :  { %2233 = vmatmul.mubr.msk.f32.gmra.mrb[10].mxu1 %vm55_vm0, %v192_v30 }
  0x33   :  { %2257 = vmatprep.mubr.msk.f32.mxu1 %vm2473_vm1, %v2472_v38 }
  0x34   :  { %2253 = vmatmul.mubr.msk.f32.gmra.mrb[10].mxu0 %vm55_vm0, %v333_v42 }
  0x35   :  { %2277 = vmatprep.mubr.msk.f32.mxu0 %vm2473_vm1, %v2472_v38 }
  0xf1   :  { %v2211_v43 = vpop.f32.mrb[0].mxu1  ;;  %v2205_v44 = vpop.f32.mrb[0].mxu0 }
  0xf2   :  { %v166_v45 = vpop.f32.mrb[1].mxu1  ;;  %v146_v46 = vpop.f32.mrb[1].mxu0 }
  0xf5   :  { %v2214_v47 = vpop.f32.mrb[2].mxu1  ;;  %v2208_v48 = vpop.f32.mrb[2].mxu0 }
  0xf6   :  { %v176_v49 = vpop.f32.mrb[3].mxu1  ;;  %v156_v50 = vpop.f32.mrb[3].mxu0 }
  0xf9   :  { %v2225_v51 = vpop.f32.mrb[4].mxu1 }
  0xfa   :  { %v287_v52 = vpop.f32.mrb[5].mxu1 }
  0xfb   :  { %2256 = vmatpush3.xpose.msk.msra.mxu1 %vm467_vm2, %v287_v52  ;;  %v2245_v59 = vpop.f32.mrb[4].mxu0 }
  0xfc   :  { %2260 = vmatprep.subr.mxu1 %v2472_v38  ;;  %v428_v60 = vpop.f32.mrb[5].mxu0 }
  0xfd   :  { %v2228_v53 = vpop.f32.mrb[6].mxu1 }
  0xfe   :  { %2258 = vmatmul.mubr.msk.f32.vlgmr.msra.gmra.mrb[12].mxu1 %vm467_vm2, %v146_v46  ;;  %v297_v54 = vpop.f32.mrb[7].mxu1 }
  0xff   :  { %2261 = vmatpush3.xpose.msk.msra.mxu1 %vm467_vm2, %v2225_v51  ;;  %2262 = vmatprep.mubr.msk.f32.mxu1 %vm2473_vm1, %v2472_v38  ;;  %v2697_v61 = vpop.f32.mrb[6].mxu0 }
 0x100   :  { %2265 = vmatprep.subr.mxu1 %v2472_v38  ;;  %v2699_v62 = vpop.f32.mrb[7].mxu0 }
 0x101   :  { %v2231_v55 = vpop.f32.mrb[8].mxu1 }
 0x102   :  { %v307_v56 = vpop.f32.mrb[9].mxu1  ;;  %2263 = vmatmul.mubr.msk.f32.vlgmr.msra.gmra.mrb[14].mxu1 %vm467_vm2, %v2205_v44 }
 0x103   :  { %2266 = vmatpush3.xpose.msk.msra.mxu1 %vm467_vm2, %v297_v54  ;;  %2276 = vmatpush3.xpose.msk.msra.mxu0 %vm467_vm2, %v307_v56  ;;  %v2701_v63 = vpop.f32.mrb[8].mxu0 }
 0x104   :  { %2267 = vmatprep.mubr.msk.f32.mxu1 %vm2473_vm1, %v2472_v38  ;;  %2270 = vmatprep.subr.mxu1 %v2472_v38  ;;  %v2703_v0 = vpop.f32.mrb[9].mxu0 }
 0x105   :  { %v2234_v57 = vpop.f32.mrb[10].mxu1  ;;  %2285 = vmatprep.subr.mxu0 %v2472_v38 }
 0x106   :  { %v317_v58 = vpop.f32.mrb[11].mxu1  ;;  %2268 = vmatmul.mubr.msk.f32.vlgmr.msra.gmra.mrb[16].mxu1 %vm467_vm2, %v156_v50  ;;  %2278 = vmatmul.mubr.msk.f32.vlgmr.msra.gmra.mrb[12].mxu0 %vm467_vm2, %v166_v45 }
 0x107   :  { %2271 = vmatpush3.xpose.msk.msra.mxu1 %vm467_vm2, %v2228_v53  ;;  %2286 = vmatpush3.xpose.msk.msra.mxu0 %vm467_vm2, %v317_v58  ;;  %v2705_v1 = vpop.f32.mrb[10].mxu0 }
 0x108   :  { %2272 = vmatprep.mubr.msk.f32.mxu1 %vm2473_vm1, %v2472_v38  ;;  %2287 = vmatprep.mubr.msk.f32.mxu0 %vm2473_vm1, %v2472_v38  ;;  %v2707_v2 = vpop.f32.mrb[11].mxu0 }
 0x109   :  { %2280 = vmatprep.subr.mxu1 %v2472_v38  ;;  %2295 = vmatprep.subr.mxu0 %v2472_v38 }
 0x10a   :  { %2273 = vmatmul.mubr.msk.f32.vlgmr.msra.gmra.mrb[18].mxu1 %vm467_vm2, %v2208_v48  ;;  %2288 = vmatmul.mubr.msk.f32.vlgmr.msra.gmra.mrb[14].mxu0 %vm467_vm2, %v176_v49 }
 0x10b   :  { %2281 = vmatpush3.xpose.msk.msra.mxu1 %vm467_vm2, %v2231_v55  ;;  %2282 = vmatprep.mubr.msk.f32.mxu1 %vm2473_vm1, %v2472_v38 }
 0x10c   :  { %2290 = vmatprep.subr.mxu1 %v2472_v38  ;;  %2297 = vmatprep.mubr.msk.f32.mxu0 %vm2473_vm1, %v2472_v38 }
 0x10d   :  { %2296 = vmatpush3.msra.mxu0 %v428_v60 }
 0x10e   :  { %2283 = vmatmul.mubr.msk.f32.vlgmr.msra.gmra.mrb[20].mxu1 %vm467_vm2, %v2211_v43  ;;  %2305 = vmatprep.subr.mxu0 %v2472_v38 }
 0x10f   :  { %2291 = vmatpush3.xpose.msk.msra.mxu1 %vm467_vm2, %v2234_v57  ;;  %2292 = vmatprep.mubr.msk.f32.mxu1 %vm2473_vm1, %v2472_v38 }
 0x110   :  { %2300 = vmatprep.subr.mxu1 %v2472_v38 }
 0x112   :  { %2293 = vmatmul.mubr.msk.f32.vlgmr.msra.gmra.mrb[22].mxu1 %vm467_vm2, %v2214_v47 }
 0x113   :  { %2302 = vmatprep.mubr.msk.f32.mxu1 %vm2473_vm1, %v2472_v38  ;;  %2301 = vmatpush3.msra.mxu1 %v2245_v59 }
 0x114   :  { %2310 = vmatprep.subr.mxu1 %v2472_v38 }
 0x1d1   :  { %v540_v3 = vpop.f32.mrb[12].mxu1 }
 0x1d2   :  { %v1076_v4 = vsel %vm467_vm2, %v540_v3, -inf  ;;  %v2259_v5 = vpop.f32.mrb[13].mxu1 }
 0x1d3   :  { %1077 = vmax.xlane.f32.xlu0 %v1076_v4 }
 0x1d5   :  { %v616_v6 = vpop.f32.mrb[14].mxu1 }
 0x1d6   :  { %v1079_v7 = vsel %vm467_vm2, %v616_v6, -inf  ;;  %v2264_v8 = vpop.f32.mrb[15].mxu1 }
 0x1d7   :  { %1080 = vmax.xlane.f32.xlu0 %v1079_v7 }
 0x1d9   :  { %v692_v9 = vpop.f32.mrb[16].mxu1  ;;  %v844_v10 = vpop.f32.mrb[12].mxu0 }
 0x1da   :  { %v2279_v11 = vpop.f32.mrb[13].mxu0  ;;  %v1082_v12 = vsel %vm467_vm2, %v692_v9, -inf  ;;  %v1088_v13 = vsel %vm467_vm2, %v844_v10, -inf  ;;  %v2269_v14 = vpop.f32.mrb[17].mxu1 }
 0x1db   :  { %1083 = vmax.xlane.f32.xlu1 %v1082_v12  ;;  %1089 = vmax.xlane.f32.xlu0 %v1088_v13 }
 0x1dd   :  { %v768_v15 = vpop.f32.mrb[18].mxu1  ;;  %v996_v16 = vpop.f32.mrb[14].mxu0 }
 0x1de   :  { %v2289_v17 = vpop.f32.mrb[15].mxu0  ;;  %v1085_v18 = vsel %vm467_vm2, %v768_v15, -inf  ;;  %v1094_v19 = vsel %vm467_vm2, %v996_v16, -inf  ;;  %v2274_v20 = vpop.f32.mrb[19].mxu1 }
 0x1df   :  { %1086 = vmax.xlane.f32.xlu1 %v1085_v18  ;;  %1095 = vmax.xlane.f32.xlu0 %v1094_v19 }
 0x1e1   :  { %v920_v21 = vpop.f32.mrb[20].mxu1 }
 0x1e2   :  { %v2284_v22 = vpop.f32.mrb[21].mxu1  ;;  %v1091_v23 = vsel %vm467_vm2, %v920_v21, -inf }
 0x1e3   :  { %1092 = vmax.xlane.f32.xlu1 %v1091_v23 }
 0x1e5   :  { %v1072_v24 = vpop.f32.mrb[22].mxu1 }
 0x1e6   :  { %v2294_v25 = vpop.f32.mrb[23].mxu1  ;;  %v1097_v26 = vsel %vm467_vm2, %v1072_v24, -inf }
 0x1e7   :  { %1098 = vmax.xlane.f32.xlu1 %v1097_v26 }
 0x260   :  { %v1078_v27 = vpop.xlane.xlu0 %1077 }
 0x261   :  { %v1100_v28 = vsub.f32 %v540_v3, %v1078_v27 }
 0x263   :  { %v1108_v29 = vmul.f32 1.442695, %v1100_v28 }
 0x264   :  { %v1081_v30 = vpop.xlane.xlu0 %1080 }
 0x265   :  { %2389 = vpow2.f32 %v1108_v29  ;;  %v1101_v31 = vsub.f32 %v616_v6, %v1081_v30 }
 0x267   :  { %v1110_v32 = vmul.f32 1.442695, %v1101_v31 }
 0x268   :  { %v1084_v33 = vpop.xlane.xlu1 %1083  ;;  %v1090_v34 = vpop.xlane.xlu0 %1089 }
 0x269   :  { %2391 = vpow2.f32 %v1110_v32  ;;  %v1102_v35 = vsub.f32 %v692_v9, %v1084_v33  ;;  %v1104_v36 = vsub.f32 %v844_v10, %v1090_v34 }
 0x26b   :  { %v1112_v37 = vmul.f32 1.442695, %v1102_v35  ;;  %v1116_v39 = vmul.f32 1.442695, %v1104_v36 }
 0x26c   :  { %v1087_v40 = vpop.xlane.xlu1 %1086  ;;  %v1096_v41 = vpop.xlane.xlu0 %1095 }
 0x26d   :  { %2393 = vpow2.f32 %v1112_v37  ;;  %v1103_v42 = vsub.f32 %v768_v15, %v1087_v40  ;;  %v1106_v43 = vsub.f32 %v996_v16, %v1096_v41 }
 0x26e   :  { %2395 = vpow2.f32 %v1116_v39 }
 0x26f   :  { %v2390_v44 = vpop.eup %2389  ;;  %v1114_v45 = vmul.f32 1.442695, %v1103_v42  ;;  %v1120_v46 = vmul.f32 1.442695, %v1106_v43 }
 0x270   :  { %v1093_v47 = vpop.xlane.xlu1 %1092  ;;  %v1124_v48 = vsel %vm467_vm2, %v2390_v44, 0.0 }
 0x271   :  { %2397 = vpow2.f32 %v1114_v45  ;;  %v1105_v49 = vsub.f32 %v920_v21, %v1093_v47  ;;  %1125 = vadd.xlane.f32.xlu0 %v1124_v48 }
 0x272   :  { %2399 = vpow2.f32 %v1120_v46 }
 0x273   :  { %v2392_v50 = vpop.eup %2391  ;;  %v1118_v51 = vmul.f32 1.442695, %v1105_v49 }
 0x274   :  { %v1099_v52 = vpop.xlane.xlu1 %1098  ;;  %v1127_v53 = vsel %vm467_vm2, %v2392_v50, 0.0 }
 0x275   :  { %2401 = vpow2.f32 %v1118_v51  ;;  %v1107_v54 = vsub.f32 %v1072_v24, %v1099_v52  ;;  %1128 = vadd.xlane.f32.xlu1 %v1127_v53 }
 0x277   :  { %v2719_v55 = vpop.eup %2393  ;;  %v1122_v56 = vmul.f32 1.442695, %v1107_v54 }
 0x278   :  { %v1130_v57 = vsel %vm467_vm2, %v2719_v55, 0.0  ;;  %v2723_v58 = vpop.eup %2395 }
 0x279   :  { %2403 = vpow2.f32 %v1122_v56  ;;  %1131 = vadd.xlane.f32.xlu0 %v1130_v57  ;;  %v1136_v3 = vsel %vm467_vm2, %v2723_v58, 0.0 }
 0x27b   :  { %v2725_v59 = vpop.eup %2397 }
 0x27c   :  { %v1133_v60 = vsel %vm467_vm2, %v2725_v59, 0.0  ;;  %v2731_v4 = vpop.eup %2399 }
 0x27d   :  { %1134 = vadd.xlane.f32.xlu1 %v1133_v60  ;;  %1137 = vadd.xlane.f32.xlu0 %v1136_v3  ;;  %v1142_v7 = vsel %vm467_vm2, %v2731_v4, 0.0 }
 0x27f   :  { %v2733_v5 = vpop.eup %2401 }
 0x280   :  { %v1139_v6 = vsel %vm467_vm2, %v2733_v5, 0.0 }
 0x281   :  { %1140 = vadd.xlane.f32.xlu1 %v1139_v6  ;;  %1143 = vadd.xlane.f32.xlu0 %v1142_v7 }
 0x283   :  { %v2739_v8 = vpop.eup %2403 }
 0x284   :  { %v1145_v9 = vsel %vm467_vm2, %v2739_v8, 0.0 }
 0x285   :  { %1146 = vadd.xlane.f32.xlu1 %v1145_v9 }
 0x2fe   :  { %v1126_v10 = vpop.xlane.xlu0 %1125 }
 0x2ff   :  { %2405 = vrcp.f32 %v1126_v10 }
 0x302   :  { %v1129_v11 = vpop.xlane.xlu1 %1128 }
 0x303   :  { %2407 = vrcp.f32 %v1129_v11 }
 0x306   :  { %v1132_v12 = vpop.xlane.xlu0 %1131 }
 0x307   :  { %2409 = vrcp.f32 %v1132_v12 }
 0x309   :  { %v2406_v13 = vpop.eup %2405 }
 0x30a   :  { %v2743_v14 = vmul.f32 %v2406_v13, %v2390_v44  ;;  %v1135_v15 = vpop.xlane.xlu1 %1134  ;;  %v1138_v16 = vpop.xlane.xlu0 %1137 }
 0x30b   :  { %2411 = vrcp.f32 %v1135_v15 }
 0x30c   :  { %2413 = vrcp.f32 %v1138_v16  ;;  %2298 = vmatmul.mubr.msk.f32.vlgmr.msra.gmra.mrb[16].mxu0 %vm467_vm2, %v2743_v14  ;;  %v1925_v21 = vrot.slane %v2743_v14, 2  ;;  %v1908_v22 = vrot.slane %v2743_v14, 1  ;;  %v1942_v23 = vrot.slane %v2743_v14, 3 }
 0x30d   :  { %v2408_v17 = vpop.eup %2407  ;;  %2306 = vmatpush3.msra.mxu0 %v2699_v62  ;;  %2307 = vmatprep.mubr.msk.f32.mxu0 %vm2473_vm1, %v2472_v38  ;;  %v1976_v62 = vrot.slane %v2743_v14, 5  ;;  %v1959_v24 = vrot.slane %v2743_v14, 4  ;;  %v2010_v25 = vrot.slane %v2743_v14, 7  ;;  %v1993_v28 = vrot.slane %v2743_v14, 6 }
 0x30e   :  { %v2750_v18 = vmul.f32 %v2408_v17, %v2392_v50  ;;  %v1141_v19 = vpop.xlane.xlu1 %1140  ;;  %v1144_v20 = vpop.xlane.xlu0 %1143  ;;  %2315 = vmatprep.subr.mxu0 %v2472_v38 }
 0x30f   :  { %2415 = vrcp.f32 %v1141_v19 }
 0x310   :  { %2417 = vrcp.f32 %v1144_v20  ;;  %2303 = vmatmul.mubr.msk.f32.vlgmr.msra.gmra.mrb[24].mxu1 %vm467_vm2, %v2750_v18  ;;  %v1926_v26 = vrot.slane %v2750_v18, 1  ;;  %v1943_v27 = vrot.slane %v2750_v18, 2  ;;  %v1909_v30 = vsel %vm1887_vm3, %v2750_v18, %v1908_v22 }
 0x311   :  { %v2410_v29 = vpop.eup %2409  ;;  %2311 = vmatpush3.msra.mxu1 %v2697_v61  ;;  %2312 = vmatprep.mubr.msk.f32.mxu1 %vm2473_vm1, %v2472_v38  ;;  %v1977_v31 = vrot.slane %v2750_v18, 4  ;;  %v1960_v32 = vrot.slane %v2750_v18, 3  ;;  %v2011_v33 = vrot.slane %v2750_v18, 6  ;;  %v1994_v37 = vrot.slane %v2750_v18, 5 }
 0x312   :  { %v2773_v34 = vmul.f32 %v2410_v29, %v2719_v55  ;;  %v1147_v35 = vpop.xlane.xlu1 %1146  ;;  %2320 = vmatprep.subr.mxu1 %v2472_v38  ;;  %v1927_v61 = vsel %vm1887_vm3, %v1926_v26, %v1925_v21  ;;  %v1944_v36 = vsel %vm1887_vm3, %v1943_v27, %v1942_v23  ;;  %v1886_v41 = vrot.slane %v2750_v18, 7 }
 0x313   :  { %2419 = vrcp.f32 %v1147_v35  ;;  %v1978_v39 = vsel %vm1887_vm3, %v1977_v31, %v1976_v62  ;;  %v1961_v40 = vsel %vm1887_vm3, %v1960_v32, %v1959_v24  ;;  %v2012_v45 = vsel %vm1887_vm3, %v2011_v33, %v2010_v25 }
 0x314   :  { %2308 = vmatmul.mubr.msk.f32.vlgmr.msra.gmra.mrb[18].mxu0 %vm467_vm2, %v2773_v34  ;;  %v1910_v42 = vrot.slane %v2773_v34, 7  ;;  %v1945_v43 = vrot.slane %v2773_v34, 1  ;;  %v1979_v44 = vrot.slane %v2773_v34, 3  ;;  %v1928_v47 = vsel %vm1890_vm4, %v2773_v34, %v1927_v61 }
 0x315   :  { %v2412_v46 = vpop.eup %2411  ;;  %2316 = vmatpush3.msra.mxu0 %v2703_v0  ;;  %2317 = vmatprep.mubr.msk.f32.mxu0 %vm2473_vm1, %v2472_v38  ;;  %v1962_v48 = vrot.slane %v2773_v34, 2  ;;  %v2013_v49 = vrot.slane %v2773_v34, 5  ;;  %v1996_v50 = vrot.slane %v2773_v34, 4  ;;  %v1995_v54 = vsel %vm1887_vm3, %v1994_v37, %v1993_v28 }
 0x316   :  { %v2414_v51 = vpop.eup %2413  ;;  %v2797_v52 = vmul.f32 %v2412_v46, %v2725_v59  ;;  %2325 = vmatprep.subr.mxu0 %v2472_v38  ;;  %v1911_v0 = vsel %vm1890_vm4, %v1910_v42, %v1909_v30  ;;  %v1946_v53 = vsel %vm1890_vm4, %v1945_v43, %v1944_v36  ;;  %v1980_v56 = vsel %vm1890_vm4, %v1979_v44, %v1978_v39 }
 0x317   :  { %v2804_v55 = vmul.f32 %v2414_v51, %v2723_v58  ;;  %v1963_v57 = vsel %vm1890_vm4, %v1962_v48, %v1961_v40  ;;  %v2809_v60 = vsel %vm1890_vm4, %v2013_v49, %v2012_v45  ;;  %v2818_v58 = vsel %vm1890_vm4, %v1996_v50, %v1995_v54 }
 0x318   :  { %2313 = vmatmul.mubr.msk.f32.vlgmr.msra.gmra.mrb[26].mxu1 %vm467_vm2, %v2797_v52  ;;  %v1929_v59 = vrot.slane %v2797_v52, 7  ;;  %v1912_v3 = vrot.slane %v2797_v52, 6  ;;  %v1947_v6 = vsel %vm1893_vm5, %v2797_v52, %v1946_v53  ;;  %v1981_v12 = vrot.slane %v2797_v52, 2 }
 0x319   :  { %v2416_v7 = vpop.eup %2415  ;;  %2318 = vmatmul.mubr.msk.f32.vlgmr.msra.gmra.mrb[20].mxu0 %vm467_vm2, %v2804_v55  ;;  %2321 = vmatpush3.msra.mxu1 %v2701_v63  ;;  %v1931_v9 = vrot.slane %v2804_v55, 6  ;;  %v1914_v10 = vrot.slane %v2804_v55, 5  ;;  %v1948_v11 = vrot.slane %v2804_v55, 7  ;;  %v1983_v17 = vrot.slane %v2804_v55, 1 }
 0x31a   :  { %v2418_v13 = vpop.eup %2417  ;;  %v2828_v15 = vmul.f32 %v2416_v7, %v2733_v5  ;;  %2326 = vmatpush3.msra.mxu0 %v2707_v2  ;;  %2322 = vmatprep.mubr.msk.f32.mxu1 %vm2473_vm1, %v2472_v38  ;;  %v1930_v63 = vsel %vm1893_vm5, %v1929_v59, %v1928_v47  ;;  %v1913_v16 = vsel %vm1893_vm5, %v1912_v3, %v1911_v0  ;;  %v1964_v20 = vrot.slane %v2797_v52, 1 }
 0x31b   :  { %v2837_v19 = vmul.f32 %v2418_v13, %v2731_v4  ;;  %2327 = vmatprep.mubr.msk.f32.mxu0 %vm2473_vm1, %v2472_v38  ;;  %2330 = vmatprep.subr.mxu1 %v2472_v38  ;;  %v1932_v5 = vsel %vm1896_vm6, %v1931_v9, %v1930_v63  ;;  %v1915_v2 = vsel %vm1896_vm6, %v1914_v10, %v1913_v16  ;;  %v2015_v35 = vrot.slane %v2797_v52, 4 }
 0x31c   :  { %2323 = vmatmul.mubr.msk.f32.vlgmr.msra.gmra.mrb[28].mxu1 %vm467_vm2, %v2828_v15  ;;  %v1933_v21 = vrot.slane %v2828_v15, 5  ;;  %v1916_v22 = vrot.slane %v2828_v15, 4  ;;  %v1949_v4 = vsel %vm1896_vm6, %v1948_v11, %v1947_v6  ;;  %v1950_v23 = vrot.slane %v2828_v15, 6 }
 0x31d   :  { %v2420_v62 = vpop.eup %2419  ;;  %2328 = vmatmul.mubr.msk.f32.vlgmr.msra.gmra.mrb[22].mxu0 %vm467_vm2, %v2837_v19  ;;  %2331 = vmatpush3.msra.mxu1 %v2705_v1  ;;  %v1935_v24 = vrot.slane %v2837_v19, 4  ;;  %v1918_v25 = vrot.slane %v2837_v19, 3  ;;  %v1952_v26 = vrot.slane %v2837_v19, 5  ;;  %v1982_v27 = vsel %vm1893_vm5, %v1981_v12, %v1980_v56 }
 0x31e   :  { %v2859_v28 = vmul.f32 %v2420_v62, %v2739_v8  ;;  %2332 = vmatprep.mubr.msk.f32.mxu1 %vm2473_vm1, %v2472_v38  ;;  %v1934_v29 = vsel %vm1899_vm8, %v1933_v21, %v1932_v5  ;;  %v1917_v30 = vsel %vm1899_vm8, %v1916_v22, %v1915_v2  ;;  %v1951_v1 = vsel %vm1899_vm8, %v1950_v23, %v1949_v4  ;;  %v1748_v62 = vld [vmem:[%s2977_s6] sm:$0xff] }
 0x31f   :  { %v1936_v31 = vsel %vm1902_vm7, %v1935_v24, %v1934_v29  ;;  %v1919_v32 = vsel %vm1902_vm7, %v1918_v25, %v1917_v30  ;;  %v1984_v33 = vsel %vm1896_vm6, %v1983_v17, %v1982_v27  ;;  %v1953_v61 = vsel %vm1902_vm7, %v1952_v26, %v1951_v1  ;;  %2335 = vmatprep.subr.mxu0 %v1748_v62 }
 0x320   :  { %2333 = vmatmul.mubr.msk.f32.vlgmr.msra.gmra.mrb[30].mxu1 %vm467_vm2, %v2859_v28  ;;  %v1937_v8 = vrot.slane %v2859_v28, 3  ;;  %v1920_v38 = vrot.slane %v2859_v28, 2  ;;  %v1954_v36 = vrot.slane %v2859_v28, 4  ;;  %v1985_v37 = vsel %vm1899_vm8, %v2828_v15, %v1984_v33  ;;  %2336 = vmatpush3.msra.mxu0 %v1748_v62 }
 0x321   :  { %v1986_v39 = vrot.slane %v2837_v19, 7  ;;  %v1965_v40 = vsel %vm1893_vm5, %v1964_v20, %v1963_v57  ;;  %v1967_v42 = vrot.slane %v2828_v15, 7  ;;  %v1988_v45 = vrot.slane %v2859_v28, 6 }
 0x322   :  { %v1938_v43 = vsel %vm1905_vm9, %v1937_v8, %v1936_v31  ;;  %v1921_v44 = vsel %vm1905_vm9, %v1920_v38, %v1919_v32  ;;  %v1966_v46 = vsel %vm1896_vm6, %v2804_v55, %v1965_v40  ;;  %v1955_v47 = vsel %vm1905_vm9, %v1954_v36, %v1953_v61 }
 0x323   :  { %1939 = vrot.lane.b32.xlu1 %v1938_v43, %s2474_s1  ;;  %1922 = vrot.lane.b32.xlu0 %v1921_v44, %s2471_s16  ;;  %v1968_v48 = vsel %vm1899_vm8, %v1967_v42, %v1966_v46  ;;  %v1969_v49 = vrot.slane %v2837_v19, 6  ;;  %v1971_v50 = vrot.slane %v2859_v28, 5  ;;  %v1987_v51 = vsel %vm1902_vm7, %v1986_v39, %v1985_v37 }
 0x324   :  { %v2016_v0 = vsel %vm1893_vm5, %v2015_v35, %v2809_v60  ;;  %v2017_v53 = vrot.slane %v2804_v55, 3  ;;  %v2019_v54 = vrot.slane %v2828_v15, 2  ;;  %v2021_v57 = vrot.slane %v2837_v19, 1 }
 0x325   :  { %v1970_v56 = vsel %vm1902_vm7, %v1969_v49, %v1968_v48  ;;  %v1998_v59 = vrot.slane %v2797_v52, 3  ;;  %v2000_v3 = vrot.slane %v2804_v55, 2  ;;  %v1989_v6 = vsel %vm1905_vm9, %v1988_v45, %v1987_v51 }
 0x326   :  { %v1972_v7 = vsel %vm1905_vm9, %v1971_v50, %v1970_v56  ;;  %v2018_v9 = vsel %vm1896_vm6, %v2017_v53, %v2016_v0  ;;  %v2002_v60 = vrot.slane %v2828_v15, 1  ;;  %v1888_v12 = vsel %vm1887_vm3, %v1886_v41, %v2743_v14 }
 0x327   :  { %1956 = vrot.lane.b32.xlu1 %v1955_v47, %s2475_s5  ;;  %1990 = vrot.lane.b32.xlu0 %v1989_v6, %s2476_s27  ;;  %v2020_v10 = vsel %vm1899_vm8, %v2019_v54, %v2018_v9  ;;  %v1999_v11 = vsel %vm1893_vm5, %v1998_v59, %v2818_v58  ;;  %v1889_v13 = vrot.slane %v2773_v34, 6  ;;  %v2005_v16 = vrot.slane %v2859_v28, 7 }
 0x328   :  { %v2022_v63 = vsel %vm1902_vm7, %v2021_v57, %v2020_v10  ;;  %v1892_v17 = vrot.slane %v2797_v52, 5  ;;  %v1895_v5 = vrot.slane %v2804_v55, 4  ;;  %v2001_v58 = vsel %vm1896_vm6, %v2000_v3, %v1999_v11 }
 0x329   :  { %v2023_v2 = vsel %vm1905_vm9, %v2859_v28, %v2022_v63  ;;  %v1891_v20 = vsel %vm1890_vm4, %v1889_v13, %v1888_v12  ;;  %v1898_v18 = vrot.slane %v2828_v15, 3  ;;  %v2003_v14 = vsel %vm1899_vm8, %v2002_v60, %v2001_v58 }
 0x32a   :  { %v1894_v34 = vsel %vm1893_vm5, %v1892_v17, %v1891_v20  ;;  %v1904_v41 = vrot.slane %v2859_v28, 1  ;;  %v1901_v21 = vrot.slane %v2837_v19, 2  ;;  %v2004_v22 = vsel %vm1902_vm7, %v2837_v19, %v2003_v14 }
 0x32b   :  { %1973 = vrot.lane.b32.xlu1 %v1972_v7, %s2477_s28  ;;  %2024 = vrot.lane.b32.xlu0 %v2023_v2, %s2478_s29  ;;  %v1897_v52 = vsel %vm1896_vm6, %v1895_v5, %v1894_v34  ;;  %v2006_v4 = vsel %vm1905_vm9, %v2005_v16, %v2004_v22 }
 0x32c   :  { %v1900_v55 = vsel %vm1899_vm8, %v1898_v18, %v1897_v52 }
 0x32d   :  { %v1903_v15 = vsel %vm1902_vm7, %v1901_v21, %v1900_v55 }
 0x32e   :  { %v1906_v23 = vsel %vm1905_vm9, %v1904_v41, %v1903_v15 }
 0x32f   :  { %2007 = vrot.lane.b32.xlu1 %v2006_v4, %s2479_s30 }
 0x395   :  { %v1940_v24 = vpop.permute.xlu1 %1939  ;;  %v1923_v25 = vpop.permute.xlu0 %1922 }
 0x396   :  { %v2027_v26 = vsel %vm467_vm2, %v1906_v23, %v1923_v25 }
 0x397   :  { %v2029_v27 = vsel %vm2028_vm10, %v2027_v26, %v1940_v24 }
 0x399   :  { %v1957_v19 = vpop.permute.xlu1 %1956  ;;  %v1991_v28 = vpop.permute.xlu0 %1990 }
 0x39a   :  { %v2031_v29 = vsel %vm2030_vm11, %v2029_v27, %v1957_v19 }
 0x39d   :  { %v1974_v30 = vpop.permute.xlu1 %1973  ;;  %v2025_v33 = vpop.permute.xlu0 %2024 }
 0x39e   :  { %v2032_v1 = vsel %vm55_vm0, %v2031_v29, %v1974_v30 }
 0x39f   :  { %v2034_v32 = vsel %vm2033_vm12, %v2032_v1, %v1991_v28 }
 0x3a1   :  { %v2008_v31 = vpop.permute.xlu1 %2007 }
 0x3a2   :  { %v2036_v35 = vsel %vm2035_vm13, %v2034_v32, %v2008_v31 }
 0x3a3   :  { %v2038_v8 = vsel %vm2037_vm14, %v2036_v35, %v2025_v33 }
 0x3a4   :  { %2040 = vst.msk [vmem:[%s2979_s8] sm:$0xff] %vm2039_vm15, %v2038_v8  ;;  %s2480_s8 = smov [#allocation5]  }
 0x3a5   :  { %s2046_s11 = sshll.u32 %s2480_s8, 4  ;;  %s2047_s11 = int_to_ptr.vmem [resolvable:$true] %s2046_s11 }
 0x3a6   :  { %s2443_s0 = scalar_lea.vmem %s2047_s11, 1024  ;;  %p2448_p9 = scmp.lt.s32.totalorder %s2047_s11, %s2047_s11 }
 0x3a7   :  { %p2444_p8 = scmp.ne.s32.totalorder %s2047_s11, %s2443_s0  ;;  %p2449_p10 = scmp.lt.s32.totalorder %s2443_s0, %s2443_s0 }
 0x3a9   :  { %p2450_p11 = por %p2449_p10, %p2448_p9 }
 0x3ab   :  { %p2451_p12 = pnand %p2450_p11, %p2444_p8 }
 0x3df   :  { %v1233_v38 = vpop.f32.mrb[16].mxu0 }
 0x3e0   :  { %v2299_v61 = vpop.f32.mrb[17].mxu0  ;;  %2337 = vmatprep.mubr.msk.f32.mxu0 %vm467_vm2, %v1233_v38 }
 0x3e3   :  { %v1306_v36 = vpop.f32.mrb[24].mxu1 }
 0x3e4   :  { %v2304_v37 = vpop.f32.mrb[25].mxu1  ;;  %2338 = vmatmul.mubr.msk.f32.vlgmr.msra.gmra.mrb[24].mxu0 %vm467_vm2, %v1306_v36 }
 0x3e7   :  { %v1379_v39 = vpop.f32.mrb[18].mxu0 }
 0x3e8   :  { %v2309_v40 = vpop.f32.mrb[19].mxu0  ;;  %2340 = vmatprep.mubr.msk.f32.mxu0 %vm467_vm2, %v1379_v39 }
 0x3eb   :  { %v1452_v42 = vpop.f32.mrb[26].mxu1 }
 0x3ec   :  { %v1525_v43 = vpop.f32.mrb[20].mxu0  ;;  %v2314_v44 = vpop.f32.mrb[27].mxu1  ;;  %2341 = vmatmul.mubr.msk.f32.gmra.mrb[26].mxu0 %vm467_vm2, %v1452_v42 }
 0x3ed   :  { %v2319_v45 = vpop.f32.mrb[21].mxu0  ;;  %2343 = vmatprep.mubr.msk.f32.mxu0 %vm467_vm2, %v1525_v43 }
 0x3ef   :  { %v1598_v46 = vpop.f32.mrb[28].mxu1 }
 0x3f0   :  { %v1671_v47 = vpop.f32.mrb[22].mxu0  ;;  %v2324_v48 = vpop.f32.mrb[29].mxu1  ;;  %2344 = vmatmul.mubr.msk.f32.gmra.mrb[28].mxu0 %vm467_vm2, %v1598_v46 }
 0x3f1   :  { %v2329_v49 = vpop.f32.mrb[23].mxu0  ;;  %2346 = vmatprep.mubr.msk.f32.mxu0 %vm467_vm2, %v1671_v47 }
 0x3f3   :  { %v1744_v50 = vpop.f32.mrb[30].mxu1 }
 0x3f4   :  { %v2334_v51 = vpop.f32.mrb[31].mxu1  ;;  %2347 = vmatmul.mubr.msk.f32.gmra.mrb[30].mxu0 %vm467_vm2, %v1744_v50 }
 0x4b7   :  { %v2339_v0 = vpop.f32.mrb[24].mxu0 }
 0x4b8   :  { %1879 = vst.msk [vmem:[#allocation5 + $0x8] sm:$0xff] %vm55_vm0, %v2339_v0  ;;  %v1839_v53 = vpop.f32.mrb[25].mxu0 }
 0x4b9   :  { %1878 = vst.msk [vmem:[#allocation5] sm:$0xff] %vm55_vm0, %v1839_v53 }
 0x4bf   :  { %v2342_v54 = vpop.f32.mrb[26].mxu0 }
 0x4c0   :  { %1881 = vst.msk [vmem:[#allocation5 + $0x18] sm:$0xff] %vm55_vm0, %v2342_v54  ;;  %v1849_v56 = vpop.f32.mrb[27].mxu0 }
 0x4c1   :  { %1880 = vst.msk [vmem:[#allocation5 + $0x10] sm:$0xff] %vm55_vm0, %v1849_v56 }
 0x4c3   :  { %v2345_v57 = vpop.f32.mrb[28].mxu0 }
 0x4c4   :  { %1883 = vst.msk [vmem:[#allocation5 + $0x28] sm:$0xff] %vm55_vm0, %v2345_v57  ;;  %v1859_v59 = vpop.f32.mrb[29].mxu0 }
 0x4c5   :  { %1882 = vst.msk [vmem:[#allocation5 + $0x20] sm:$0xff] %vm55_vm0, %v1859_v59 }
 0x4c7   :  { %v2348_v3 = vpop.f32.mrb[30].mxu0 }
 0x4c8   :  { %1885 = vst.msk [vmem:[#allocation5 + $0x38] sm:$0xff] %vm55_vm0, %v2348_v3  ;;  %v1869_v6 = vpop.f32.mrb[31].mxu0 }
 0x4c9   :  { %1884 = vst.msk [vmem:[#allocation5 + $0x30] sm:$0xff] %vm55_vm0, %v1869_v6 }
 0x4ca   :  { %2454 = shalt.err (!%p2451_p12)
}
 0x4cb   :  { %s2455_s14 = scalar_lea.hbm %s2978_s7, 1024 }
 0x4cc   :  { %p2456_p13 = scmp.ne.s32.totalorder %s2978_s7, %s2455_s14  ;;  %p2459_p0 = scmp.lt.u32.totalorder %s2455_s14, %s2978_s7 }
 0x4ce   :  { %p2461_p1 = pnand %p2459_p0, %p2456_p13 }
 0x4d0   :  { %2464 = shalt.err (!%p2461_p1)
}
 0x4d1   :  { %2052 = dma.vmem_to_hbm [thread:$0]  %s2047_s11, 1024, %s2978_s7, [#allocation4], %s2470_s15, %s2470_s15, %s2471_s16  }
 0x4d2   :  { %2467 = dma.done.wait [#allocation4], 1024  }
 0x4d3   :  { %2468 = vsyncadd [#allocation4], 4294966272 }
 0x4d4   :  { %2060 = vsyncpa [#allocation3], 1 }
 0x4d5   :  { %2061 = vsyncpa [#allocation4], 1 }

</bundles_post_ra>
